<compile_context>
chip_gen: v7x
topology: tpu7x:2x2x1
jax: 0.10.0
libtpu: 0.0.40
codegen_flags: <defaults>
</compile_context>

<pallas_src>
import jax
import jax.numpy as jnp
from jax.experimental import pallas as pl
from jax.experimental.pallas import tpu as pltpu


# ----------------------------------------------------------------------------
# Small integer helpers (all geometry is Python-int, resolved at trace time).
# ----------------------------------------------------------------------------
def _round_up(a, m):
    return (a + m - 1) // m * m


def _cdiv(a, b):
    return -(-a // b)


def _vmem_budget_bytes():
    """VMEM budget with headroom: ~96 MiB on 128-MiB chips, ~48 MiB on v7x."""
    cap = 64 * 1024 * 1024  # conservative fallback (v7x physical VMEM)
    try:
        cap = int(pltpu.get_tpu_info().vmem_capacity_bytes)
    except Exception:
        pass
    return min(cap - cap // 4, 96 * 1024 * 1024)


def _pick_batch_tile(B):
    """Balanced batch tiles (<=512 rows), waste < 16 rows per tile; split into
    >=2 tiles when B is large enough so both v7x TensorCores get work."""
    n_bt = _cdiv(B, 512)
    TB = _round_up(_cdiv(B, n_bt), 16)
    if _cdiv(B, TB) < 2 and TB >= 32:          # megacore: ensure >= 2 parallel tiles
        TB = _round_up(_cdiv(B, 2), 16)
    return TB


# ----------------------------------------------------------------------------
# Kernels
# ----------------------------------------------------------------------------
def _ssl_kernel_resident(x_ref, w1_ref, scale_ref, shift_ref, w2_ref, b2_ref,
                         o_ref, h_ref, hb_ref):
    # x_ref:     (TB, K)    native dtype  batch tile of flattened input
    # w1_ref:    (K, NHp)   bf16          first Linear weight (VMEM-resident)
    # scale_ref: (1, NHp)   f32           folded BN scale = gamma / sqrt(var+eps)
    # shift_ref: (1, NHp)   f32           folded BN shift = beta - mean*scale
    # w2_ref:    (NHp, NCp) bf16          second Linear weight (resident)
    # b2_ref:    (1, NCp)   f32           second Linear bias (resident)
    # o_ref:     (TB, NCp)  f32           logits (lane-dense, padded classes)
    # h_ref:     (TB, NHp)  f32 scratch   hidden pre-activation
    # hb_ref:    (TB, NHp)  bf16 scratch  hidden activation for second matmul
    h_ref[...] = jnp.dot(x_ref[...].astype(jnp.bfloat16), w1_ref[...],
                         preferred_element_type=jnp.float32)
    hb_ref[...] = jnp.maximum(h_ref[...] * scale_ref[...] + shift_ref[...],
                              0.0).astype(jnp.bfloat16)
    o_ref[...] = (jnp.dot(hb_ref[...], w2_ref[...],
                          preferred_element_type=jnp.float32)
                  + b2_ref[...]).astype(o_ref.dtype)


def _ssl_kernel_ktiled(x_ref, w1_ref, scale_ref, shift_ref, w2_ref, b2_ref,
                       o_ref, acc_ref, hb_ref):
    # Fallback for very large n_input*n_hidden: K is a reduction grid axis.
    k = pl.program_id(1)
    part = jnp.dot(x_ref[...].astype(jnp.bfloat16), w1_ref[...],
                   preferred_element_type=jnp.float32)

    @pl.when(k == 0)
    def _():                      # direct store: no zero-init pass
        acc_ref[...] = part

    @pl.when(k > 0)
    def _():
        acc_ref[...] += part

    @pl.when(k == pl.num_programs(1) - 1)
    def _():
        hb_ref[...] = jnp.maximum(acc_ref[...] * scale_ref[...] + shift_ref[...],
                                  0.0).astype(jnp.bfloat16)
        o_ref[...] = (jnp.dot(hb_ref[...], w2_ref[...],
                              preferred_element_type=jnp.float32)
                      + b2_ref[...]).astype(o_ref.dtype)


# ----------------------------------------------------------------------------
# Parameter preparation (hoisted out of the per-call path; do this once per
# checkpoint — under jit with constant params it constant-folds).
# ----------------------------------------------------------------------------
def ssl_evaluator_prepare(w1, bn_gamma, bn_beta, bn_mean, bn_var, w2, b2,
                          eps=1e-5):
    n_input, n_hidden = w1.shape
    n_classes = w2.shape[1]
    NHp = _round_up(n_hidden, 128)        # lane-dense hidden dim (keep 128-mult)
    NCp = _round_up(n_classes, 128)       # lane-dense output dim

    scale = bn_gamma.astype(jnp.float32) / jnp.sqrt(bn_var.astype(jnp.float32) + eps)
    shift = bn_beta.astype(jnp.float32) - bn_mean.astype(jnp.float32) * scale

    scale_p = jnp.pad(scale, (0, NHp - n_hidden)).reshape(1, NHp)
    shift_p = jnp.pad(shift, (0, NHp - n_hidden)).reshape(1, NHp)
    b2_p = jnp.pad(b2.astype(jnp.float32), (0, NCp - n_classes)).reshape(1, NCp)
    # Zero padding keeps padded hidden/class lanes mathematically inert.
    w1_p = jnp.pad(w1.astype(jnp.bfloat16), ((0, 0), (0, NHp - n_hidden)))
    w2_p = jnp.pad(w2.astype(jnp.bfloat16),
                   ((0, NHp - n_hidden), (0, NCp - n_classes)))
    return dict(w1=w1_p, scale=scale_p, shift=shift_p, w2=w2_p, b2=b2_p,
                n_input=n_input, n_hidden=n_hidden, n_classes=n_classes)


# ----------------------------------------------------------------------------
# Forward
# ----------------------------------------------------------------------------
def ssl_evaluator_forward(x, params):
    """Fused Flatten -> Linear -> BN(eval) -> ReLU -> Linear(+bias) forward."""
    B = x.shape[0]
    x_flat = x.reshape(B, -1)                       # nn.Flatten (row-major)
    n_input = params["n_input"]
    assert x_flat.shape[1] == n_input
    NHp = params["w1"].shape[1]
    NCp = params["w2"].shape[1]
    n_classes = params["n_classes"]
    xbytes = x_flat.dtype.itemsize

    TB = _pick_batch_tile(B)
    Bp = _round_up(B, TB)
    n_bt = Bp // TB
    budget = _vmem_budget_bytes()
    headroom = 2 * 1024 * 1024

    # Footprint of the w1-resident path (double-buffered inputs/outputs +
    # scratch for h).  Fits all SSLEvaluator-scale problems on v5e/v6e/v7x.
    resident_bytes = (2 * TB * n_input * xbytes     # x tiles (double-buffered)
                      + 2 * n_input * NHp * 2       # w1 (resident)
                      + 2 * NHp * NCp * 2           # w2 (resident)
                      + 2 * TB * NCp * 4            # output tiles
                      + TB * NHp * (4 + 2)          # h / hb scratch
                      + 2 * (2 * NHp * 4 + NCp * 4))

    if resident_bytes + headroom <= budget:
        # ---- primary path: no K axis, w1 fully VMEM-resident ---------------
        x_in = x_flat if Bp == B else jnp.pad(x_flat, ((0, Bp - B), (0, 0)))
        cost = pl.CostEstimate(
            flops=2 * Bp * n_input * NHp + 2 * Bp * NHp * NCp,
            transcendentals=0,
            bytes_accessed=(Bp * n_input * xbytes + n_input * NHp * 2
                            + NHp * NCp * 2 + Bp * NCp * 4
                            + 2 * NHp * 4 + NCp * 4))
        out = pl.pallas_call(
            _ssl_kernel_resident,
            out_shape=jax.ShapeDtypeStruct((Bp, NCp), jnp.float32),
            grid=(n_bt,),
            in_specs=[
                pl.BlockSpec((TB, n_input), lambda i: (i, 0)),    # x (streamed)
                pl.BlockSpec((n_input, NHp), lambda i: (0, 0)),   # w1 (resident)
                pl.BlockSpec((1, NHp), lambda i: (0, 0)),         # BN scale
                pl.BlockSpec((1, NHp), lambda i: (0, 0)),         # BN shift
                pl.BlockSpec((NHp, NCp), lambda i: (0, 0)),       # w2
                pl.BlockSpec((1, NCp), lambda i: (0, 0)),         # b2
            ],
            out_specs=pl.BlockSpec((TB, NCp), lambda i: (i, 0)),
            scratch_shapes=[pltpu.VMEM((TB, NHp), jnp.float32),
                            pltpu.VMEM((TB, NHp), jnp.bfloat16)],
            compiler_params=pltpu.CompilerParams(
                dimension_semantics=("parallel",),
                vmem_limit_bytes=budget),
            cost_estimate=cost,
        )(x_in, params["w1"], params["scale"], params["shift"],
          params["w2"], params["b2"])
        return out[:B, :n_classes]

    # ---- fallback path: K-tiled reduction grid (very large n_input*NHp) ----
    Kp0 = _round_up(n_input, 128)

    def _footprint(tk):
        return (2 * TB * tk * xbytes + 2 * tk * NHp * 2 + 2 * NHp * NCp * 2
                + 2 * TB * NCp * 4 + TB * NHp * (4 + 2)
                + 2 * (2 * NHp * 4 + NCp * 4) + headroom)

    tk_target = 2048
    while tk_target > 256 and _footprint(tk_target) > budget:
        tk_target //= 2
    nk = _cdiv(Kp0, tk_target)
    TK = _round_up(_cdiv(Kp0, nk), 128)             # divisor-like: pad <= nk*128
    Kp = nk * TK

    x_in = x_flat
    if Bp != B or Kp != n_input:
        x_in = jnp.pad(x_flat, ((0, Bp - B), (0, Kp - n_input)))
    w1_in = params["w1"]
    if Kp != n_input:
        w1_in = jnp.pad(w1_in, ((0, Kp - n_input), (0, 0)))

    cost = pl.CostEstimate(
        flops=2 * Bp * Kp * NHp + 2 * Bp * NHp * NCp,
        transcendentals=0,
        bytes_accessed=(Bp * Kp * xbytes + n_bt * Kp * NHp * 2   # w1 re-streamed
                        + NHp * NCp * 2 + Bp * NCp * 4
                        + 2 * NHp * 4 + NCp * 4))
    out = pl.pallas_call(
        _ssl_kernel_ktiled,
        out_shape=jax.ShapeDtypeStruct((Bp, NCp), jnp.float32),
        grid=(n_bt, nk),
        in_specs=[
            pl.BlockSpec((TB, TK), lambda i, k: (i, k)),      # x tile
            pl.BlockSpec((TK, NHp), lambda i, k: (k, 0)),     # w1 K-tile
            pl.BlockSpec((1, NHp), lambda i, k: (0, 0)),      # BN scale
            pl.BlockSpec((1, NHp), lambda i, k: (0, 0)),      # BN shift
            pl.BlockSpec((NHp, NCp), lambda i, k: (0, 0)),    # w2
            pl.BlockSpec((1, NCp), lambda i, k: (0, 0)),      # b2
        ],
        out_specs=pl.BlockSpec((TB, NCp), lambda i, k: (i, 0)),
        scratch_shapes=[pltpu.VMEM((TB, NHp), jnp.float32),
                        pltpu.VMEM((TB, NHp), jnp.bfloat16)],
        compiler_params=pltpu.CompilerParams(
            dimension_semantics=("parallel", "arbitrary"),
            vmem_limit_bytes=budget),
        cost_estimate=cost,
    )(x_in, w1_in, params["scale"], params["shift"],
      params["w2"], params["b2"])
    return out[:B, :n_classes]


# ----------------------------------------------------------------------------
# Reference (matches the kernel's intentional bf16 quantization of x/w1/w2/h).
# ----------------------------------------------------------------------------
def _reference_forward(x, w1, bn_gamma, bn_beta, bn_mean, bn_var, w2, b2,
                       eps=1e-5):
    B = x.shape[0]
    xf = x.reshape(B, -1).astype(jnp.bfloat16).astype(jnp.float32)
    w1f = w1.astype(jnp.bfloat16).astype(jnp.float32)
    w2f = w2.astype(jnp.bfloat16).astype(jnp.float32)
    scale = bn_gamma / jnp.sqrt(bn_var + eps)
    shift = bn_beta - bn_mean * scale
    h = jnp.dot(xf, w1f, precision=jax.lax.Precision.HIGHEST)
    h = jnp.maximum(h * scale + shift, 0.0)
    hb = h.astype(jnp.bfloat16).astype(jnp.float32)
    return jnp.dot(hb, w2f, precision=jax.lax.Precision.HIGHEST) + b2


if __name__ == "__main__":
    # Small shapes: batch=2, channels=4, spatial=16x16 -> n_input = 1024
    B, C, H, W = 2, 4, 16, 16
    n_input = C * H * W
    n_hidden = 32
    n_classes = 10

    key = jax.random.PRNGKey(0)
    kx, k1, k2, k3 = jax.random.split(key, 4)

    x = jax.random.normal(kx, (B, C, H, W), dtype=jnp.float32)

    # Synthetic parameters (shapes match nn.Linear(in,out).weight.T / BatchNorm1d).
    w1 = jax.random.normal(k1, (n_input, n_hidden), jnp.float32) * (1.0 / n_input ** 0.5)
    bn_gamma = jnp.full((n_hidden,), 1.2, jnp.float32)
    bn_beta = jnp.full((n_hidden,), 0.1, jnp.float32)
    bn_mean = jax.random.normal(k3, (n_hidden,), jnp.float32) * 0.05
    bn_var = jnp.full((n_hidden,), 0.9, jnp.float32)
    w2 = jax.random.normal(k2, (n_hidden, n_classes), jnp.float32) * (1.0 / n_hidden ** 0.5)
    b2 = jnp.linspace(-0.1, 0.1, n_classes).astype(jnp.float32)

    params = ssl_evaluator_prepare(w1, bn_gamma, bn_beta, bn_mean, bn_var, w2, b2)
    out = ssl_evaluator_forward(x, params)
    out = jax.block_until_ready(out)

    ref = _reference_forward(x, w1, bn_gamma, bn_beta, bn_mean, bn_var, w2, b2)
    assert out.shape == (B, n_classes)
    max_err = float(jnp.max(jnp.abs(out - ref)))
    assert jnp.allclose(out, ref, atol=1e-2, rtol=1e-2), (
        f"mismatch vs reference (max abs err {max_err})")

    print("KERNEL_OK")
</pallas_src>

<mosaic_0001>
module attributes {stable_mosaic.version = 11 : i64} {
  func.func @_ssl_kernel_resident(%arg0: i32, %arg1: memref<16x1024xf32, #tpu.memory_space<vmem>>, %arg2: memref<1024x128xbf16, #tpu.memory_space<vmem>>, %arg3: memref<1x128xf32, #tpu.memory_space<vmem>>, %arg4: memref<1x128xf32, #tpu.memory_space<vmem>>, %arg5: memref<128x128xbf16, #tpu.memory_space<vmem>>, %arg6: memref<1x128xf32, #tpu.memory_space<vmem>>, %arg7: memref<16x128xf32, #tpu.memory_space<vmem>>, %arg8: memref<16x128xf32, #tpu.memory_space<vmem>>, %arg9: memref<16x128xbf16, #tpu.memory_space<vmem>>) attributes {dimension_semantics = [#tpu.dimension_semantics<parallel>], iteration_bounds = array<i64: 1>, scalar_prefetch = 0 : i64, scratch_operands = 2 : i64, tpu.core_type = #tpu.core_type<tc>, window_params = [{transform_indices = @transform_0, window_bounds = array<i64: 16, 1024>}, {pipeline_mode = #tpu.pipeline_mode<synchronous>, transform_indices = @transform_1, window_bounds = array<i64: 1024, 128>}, {pipeline_mode = #tpu.pipeline_mode<synchronous>, transform_indices = @transform_2, window_bounds = array<i64: 1, 128>}, {pipeline_mode = #tpu.pipeline_mode<synchronous>, transform_indices = @transform_3, window_bounds = array<i64: 1, 128>}, {pipeline_mode = #tpu.pipeline_mode<synchronous>, transform_indices = @transform_4, window_bounds = array<i64: 128, 128>}, {pipeline_mode = #tpu.pipeline_mode<synchronous>, transform_indices = @transform_5, window_bounds = array<i64: 1, 128>}, {transform_indices = @transform_6, window_bounds = array<i64: 16, 128>}]} {
    %c0 = arith.constant 0 : index
    %c0_0 = arith.constant 0 : index
    %0 = vector.load %arg1[%c0, %c0_0] : memref<16x1024xf32, #tpu.memory_space<vmem>>, vector<16x1024xf32>
    %1 = arith.truncf %0 : vector<16x1024xf32> to vector<16x1024xbf16>
    %c0_1 = arith.constant 0 : index
    %c0_2 = arith.constant 0 : index
    %2 = vector.load %arg2[%c0_1, %c0_2] : memref<1024x128xbf16, #tpu.memory_space<vmem>>, vector<1024x128xbf16>
    %cst = arith.constant dense<0.000000e+00> : vector<16x128xf32>
    %3 = tpu.matmul %1, %2, %cst {dimension_numbers = #tpu.dot_dimension_numbers<[1], [0], [0], [1], [0, 0, 1, 1], [], []>} : vector<16x1024xbf16>, vector<1024x128xbf16>, vector<16x128xf32> -> vector<16x128xf32>
    %c0_3 = arith.constant 0 : index
    %c0_4 = arith.constant 0 : index
    %4 = vector.load %arg8[%c0_3, %c0_4] : memref<16x128xf32, #tpu.memory_space<vmem>>, vector<16x128xf32>
    tpu.vector_store %arg8[%c0_3, %c0_4], %3 {strides = array<i32>} : memref<16x128xf32, #tpu.memory_space<vmem>>, vector<16x128xf32>,
    %c0_5 = arith.constant 0 : index
    %c0_6 = arith.constant 0 : index
    %5 = vector.load %arg8[%c0_5, %c0_6] : memref<16x128xf32, #tpu.memory_space<vmem>>, vector<16x128xf32>
    %c0_7 = arith.constant 0 : index
    %c0_8 = arith.constant 0 : index
    %6 = vector.load %arg3[%c0_7, %c0_8] : memref<1x128xf32, #tpu.memory_space<vmem>>, vector<1x128xf32>
    %7 = vector.broadcast %6 : vector<1x128xf32> to vector<16x128xf32>
    %8 = arith.mulf %5, %7 : vector<16x128xf32>
    %c0_9 = arith.constant 0 : index
    %c0_10 = arith.constant 0 : index
    %9 = vector.load %arg4[%c0_9, %c0_10] : memref<1x128xf32, #tpu.memory_space<vmem>>, vector<1x128xf32>
    %10 = vector.broadcast %9 : vector<1x128xf32> to vector<16x128xf32>
    %11 = arith.addf %8, %10 : vector<16x128xf32>
    %cst_11 = arith.constant 0.000000e+00 : f32
    %12 = vector.broadcast %cst_11 : f32 to vector<16x128xf32>
    %13 = arith.maximumf %11, %12 : vector<16x128xf32>
    %14 = arith.truncf %13 : vector<16x128xf32> to vector<16x128xbf16>
    %c0_12 = arith.constant 0 : index
    %c0_13 = arith.constant 0 : index
    %15 = vector.load %arg9[%c0_12, %c0_13] : memref<16x128xbf16, #tpu.memory_space<vmem>>, vector<16x128xbf16>
    tpu.vector_store %arg9[%c0_12, %c0_13], %14 {strides = array<i32>} : memref<16x128xbf16, #tpu.memory_space<vmem>>, vector<16x128xbf16>,
    %c0_14 = arith.constant 0 : index
    %c0_15 = arith.constant 0 : index
    %16 = vector.load %arg9[%c0_14, %c0_15] : memref<16x128xbf16, #tpu.memory_space<vmem>>, vector<16x128xbf16>
    %c0_16 = arith.constant 0 : index
    %c0_17 = arith.constant 0 : index
    %17 = vector.load %arg5[%c0_16, %c0_17] : memref<128x128xbf16, #tpu.memory_space<vmem>>, vector<128x128xbf16>
    %cst_18 = arith.constant dense<0.000000e+00> : vector<16x128xf32>
    %18 = tpu.matmul %16, %17, %cst_18 {dimension_numbers = #tpu.dot_dimension_numbers<[1], [0], [0], [1], [0, 0, 1, 1], [], []>} : vector<16x128xbf16>, vector<128x128xbf16>, vector<16x128xf32> -> vector<16x128xf32>
    %c0_19 = arith.constant 0 : index
    %c0_20 = arith.constant 0 : index
    %19 = vector.load %arg6[%c0_19, %c0_20] : memref<1x128xf32, #tpu.memory_space<vmem>>, vector<1x128xf32>
    %20 = vector.broadcast %19 : vector<1x128xf32> to vector<16x128xf32>
    %21 = arith.addf %18, %20 : vector<16x128xf32>
    %c0_21 = arith.constant 0 : index
    %c0_22 = arith.constant 0 : index
    %22 = vector.load %arg7[%c0_21, %c0_22] : memref<16x128xf32, #tpu.memory_space<vmem>>, vector<16x128xf32>
    tpu.vector_store %arg7[%c0_21, %c0_22], %21 {strides = array<i32>} : memref<16x128xf32, #tpu.memory_space<vmem>>, vector<16x128xf32>,
    return
  }
  func.func @transform_0(%arg0: i32) -> (i32, i32) {
    %c0_i32 = arith.constant 0 : i32
    %c0_i32_0 = arith.constant 0 : i32
    return %arg0, %c0_i32 : i32, i32
  }
  func.func @transform_1(%arg0: i32) -> (i32, i32) {
    %c0_i32 = arith.constant 0 : i32
    %c0_i32_0 = arith.constant 0 : i32
    %c0_i32_1 = arith.constant 0 : i32
    return %c0_i32, %c0_i32_0 : i32, i32
  }
  func.func @transform_2(%arg0: i32) -> (i32, i32) {
    %c0_i32 = arith.constant 0 : i32
    %c0_i32_0 = arith.constant 0 : i32
    %c0_i32_1 = arith.constant 0 : i32
    return %c0_i32, %c0_i32_0 : i32, i32
  }
  func.func @transform_3(%arg0: i32) -> (i32, i32) {
    %c0_i32 = arith.constant 0 : i32
    %c0_i32_0 = arith.constant 0 : i32
    %c0_i32_1 = arith.constant 0 : i32
    return %c0_i32, %c0_i32_0 : i32, i32
  }
  func.func @transform_4(%arg0: i32) -> (i32, i32) {
    %c0_i32 = arith.constant 0 : i32
    %c0_i32_0 = arith.constant 0 : i32
    %c0_i32_1 = arith.constant 0 : i32
    return %c0_i32, %c0_i32_0 : i32, i32
  }
  func.func @transform_5(%arg0: i32) -> (i32, i32) {
    %c0_i32 = arith.constant 0 : i32
    %c0_i32_0 = arith.constant 0 : i32
    %c0_i32_1 = arith.constant 0 : i32
    return %c0_i32, %c0_i32_0 : i32, i32
  }
  func.func @transform_6(%arg0: i32) -> (i32, i32) {
    %c0_i32 = arith.constant 0 : i32
    %c0_i32_0 = arith.constant 0 : i32
    return %arg0, %c0_i32 : i32, i32
  }
}

</mosaic_0001>

<bundles_post_ra>
// kernel: tpu_custom_call.1
= control target key start
LH: loop header
LB: loop body
LE: loop exit
PB: predicated region body
PF: predicated region fallthrough
CT: control target
= control target key end

     0   :  { %11 = vsyncpa [#allocation5], 0  ;;  %s1404_s0 = inlined_call_operand.hbm [shape: f32[16,1024], index: 0, kind: input, shape index: {}]   ;;  %s1405_s1 = inlined_call_operand.hbm [shape: bf16[1024,128], index: 1, kind: input, shape index: {}]   ;;  %s1406_s2 = inlined_call_operand.vmem [shape: f32[1,128], index: 2, kind: input, shape index: {}]   ;;  %s1407_s3 = inlined_call_operand.vmem [shape: f32[1,128], index: 3, kind: input, shape index: {}]   ;;  %s1408_s4 = inlined_call_operand.hbm [shape: bf16[128,128], index: 4, kind: input, shape index: {}]   ;;  %s1409_s5 = inlined_call_operand.vmem [shape: f32[1,128], index: 5, kind: input, shape index: {}]   ;;  %s1410_s6 = inlined_call_operand.hbm [shape: f32[16,128], index: 6, kind: output, shape index: {}]  }
   0x1   :  { %12 = vsyncpa [#allocation8], 0 }
   0x2   :  { %13 = vsyncpa [#allocation6], 0  ;;  %s1294_s21 = smov [#allocation7]   ;;  %s1200_s25 = scalar_lea.hbm %s1405_s1, 8192 }
   0x3   :  { %s31_s22 = sshll.u32 %s1294_s21, 4  ;;  %p1201_p0 = scmp.ne.s32.totalorder %s1405_s1, %s1200_s25  ;;  %s32_s22 = int_to_ptr.vmem [resolvable:$true] %s31_s22 }
   0x4   :  { %p1204_p1 = scmp.lt.u32.totalorder %s1200_s25, %s1405_s1 }
   0x6   :  { %p1206_p2 = pnand %p1204_p1, %p1201_p0 }
   0x8   :  { %1209 = shalt.err (!%p1206_p2)
}
   0x9   :  { %s1210_s30 = scalar_lea.vmem %s32_s22, 8192  ;;  %p1215_p4 = scmp.lt.s32.totalorder %s32_s22, %s32_s22 }
   0xa   :  { %p1211_p3 = scmp.ne.s32.totalorder %s32_s22, %s1210_s30  ;;  %p1216_p5 = scmp.lt.s32.totalorder %s1210_s30, %s1210_s30 }
   0xc   :  { %p1217_p6 = por %p1216_p5, %p1215_p4 }
   0xe   :  { %p1218_p7 = pnand %p1217_p6, %p1211_p3 }
  0x10   :  { %1221 = shalt.err (!%p1218_p7)
}
  0x11   :  { %s1295_s7 = smov 64   ;;  %s1296_s8 = smov 4  }
  0x12   :  { %37 = dma.hbm_to_vmem [thread:$0]  %s1405_s1, 8192, %s32_s22, [#allocation8], %s1295_s7, %s1295_s7, %s1296_s8  }
  0x13   :  { %s1297_s11 = smov [#allocation4]   ;;  %s1222_s15 = scalar_lea.hbm %s1404_s0, 2048 }
  0x14   :  { %s19_s12 = sshll.u32 %s1297_s11, 4  ;;  %p1223_p8 = scmp.ne.s32.totalorder %s1404_s0, %s1222_s15  ;;  %s20_s12 = int_to_ptr.vmem [resolvable:$true] %s19_s12 }
  0x15   :  { %p1226_p9 = scmp.lt.u32.totalorder %s1222_s15, %s1404_s0 }
  0x17   :  { %p1228_p10 = pnand %p1226_p9, %p1223_p8 }
  0x19   :  { %1231 = shalt.err (!%p1228_p10)
}
  0x1a   :  { %s1232_s20 = scalar_lea.vmem %s20_s12, 2048  ;;  %p1237_p12 = scmp.lt.s32.totalorder %s20_s12, %s20_s12 }
  0x1b   :  { %p1233_p11 = scmp.ne.s32.totalorder %s20_s12, %s1232_s20  ;;  %p1238_p13 = scmp.lt.s32.totalorder %s1232_s20, %s1232_s20 }
  0x1d   :  { %p1239_p0 = por %p1238_p13, %p1237_p12 }
  0x1f   :  { %p1240_p1 = pnand %p1239_p0, %p1233_p11 }
  0x21   :  { %1243 = shalt.err (!%p1240_p1)
}
  0x22   :  { %s1298_s1 = smov 1024   ;;  %s1299_s23 = smov [#allocation9]  }
  0x23   :  { %25 = dma.hbm_to_vmem [thread:$0]  %s1404_s0, 2048, %s20_s12, [#allocation5], %s1298_s1, %s1298_s1, %s1295_s7  }
  0x24   :  { %s47_s24 = sshll.u32 %s1299_s23, 4  ;;  %s1244_s27 = scalar_lea.hbm %s1408_s4, 1024  ;;  %s48_s24 = int_to_ptr.vmem [resolvable:$true] %s47_s24 }
  0x25   :  { %p1245_p2 = scmp.ne.s32.totalorder %s1408_s4, %s1244_s27  ;;  %p1248_p3 = scmp.lt.u32.totalorder %s1244_s27, %s1408_s4 }
  0x27   :  { %p1250_p4 = pnand %p1248_p3, %p1245_p2 }
  0x29   :  { %1253 = shalt.err (!%p1250_p4)
}
  0x2a   :  { %s1254_s10 = scalar_lea.vmem %s48_s24, 1024  ;;  %p1259_p6 = scmp.lt.s32.totalorder %s48_s24, %s48_s24 }
  0x2b   :  { %p1255_p5 = scmp.ne.s32.totalorder %s48_s24, %s1254_s10  ;;  %p1260_p7 = scmp.lt.s32.totalorder %s1254_s10, %s1254_s10 }
  0x2d   :  { %p1261_p8 = por %p1260_p7, %p1259_p6 }
  0x2f   :  { %p1262_p9 = pnand %p1261_p8, %p1255_p5 }
  0x31   :  { %1265 = shalt.err (!%p1262_p9)
}
  0x32   :  { %53 = dma.hbm_to_vmem [thread:$0]  %s1408_s4, 1024, %s48_s24, [#allocation8], %s1295_s7, %s1295_s7, %s1296_s8  }
  0x33   :  { %1288 = dma.done.wait [#allocation5], 2048  }
  0x34   :  { %1289 = vsyncadd [#allocation5], 4294965248 }
  0x35   :  { %1290 = dma.done.wait [#allocation8], 9216  }
  0x36   :  { %1291 = vsyncadd [#allocation8], 4294958080  ;;  %v1128_v0 = vld [vmem:[#allocation7 + $0x40] sm:$0xff]   ;;  %v1132_v4 = vld [vmem:[#allocation7 + $0x48] sm:$0xff]   ;;  %vm1301_vm0 = vmmov 0  }
  0x37   :  { %v1129_v1 = vld [vmem:[#allocation7 + $0xc0] sm:$0xff]   ;;  %1000 = vmatprep.subr.bf16.mxu0 %v1128_v0  ;;  %v1133_v5 = vld [vmem:[#allocation7 + $0xc8] sm:$0xff]   ;;  %v1136_v8 = vld [vmem:[#allocation7 + $0x50] sm:$0xff]  }
  0x38   :  { %v1130_v2 = vld [vmem:[#allocation7] sm:$0xff]   ;;  %1022 = vmatprep.subr.bf16.mxu1 %v1129_v1  ;;  %v1134_v6 = vld [vmem:[#allocation7 + $0x8] sm:$0xff]   ;;  %v1137_v9 = vld [vmem:[#allocation7 + $0xd0] sm:$0xff]  }
  0x39   :  { %v1131_v3 = vld [vmem:[#allocation7 + $0x80] sm:$0xff]   ;;  %1001 = vmatpush3.bf16.msra.mxu0 %v1130_v2  ;;  %v1135_v7 = vld [vmem:[#allocation7 + $0x88] sm:$0xff]   ;;  %v1138_v10 = vld [vmem:[#allocation7 + $0x10] sm:$0xff]  }
  0x3a   :  { %1023 = vmatpush3.bf16.msra.mxu1 %v1131_v3  ;;  %1002 = vmatprep.subr.bf16.mxu0 %v1132_v4  ;;  %v1139_v11 = vld [vmem:[#allocation7 + $0x90] sm:$0xff]   ;;  %v1140_v12 = vld [vmem:[#allocation7 + $0x58] sm:$0xff]   ;;  %v1144_v16 = vld [vmem:[#allocation7 + $0x60] sm:$0xff]  }
  0x3b   :  { %1024 = vmatprep.subr.bf16.mxu1 %v1133_v5  ;;  %v1141_v13 = vld [vmem:[#allocation7 + $0xd8] sm:$0xff]   ;;  %v1145_v17 = vld [vmem:[#allocation7 + $0xe0] sm:$0xff]   ;;  %v1148_v20 = vld [vmem:[#allocation7 + $0x68] sm:$0xff]  }
  0x3c   :  { %v1142_v14 = vld [vmem:[#allocation7 + $0x18] sm:$0xff]   ;;  %v1146_v18 = vld [vmem:[#allocation7 + $0x20] sm:$0xff]   ;;  %v1149_v21 = vld [vmem:[#allocation7 + $0xe8] sm:$0xff]  }
  0x3d   :  { %1003 = vmatpush3.bf16.msra.mxu0 %v1134_v6  ;;  %v1143_v15 = vld [vmem:[#allocation7 + $0x98] sm:$0xff]   ;;  %v1147_v19 = vld [vmem:[#allocation7 + $0xa0] sm:$0xff]   ;;  %v1150_v22 = vld [vmem:[#allocation7 + $0x28] sm:$0xff]  }
  0x3e   :  { %1025 = vmatpush3.bf16.msra.mxu1 %v1135_v7  ;;  %1004 = vmatprep.subr.bf16.mxu0 %v1136_v8  ;;  %v1151_v23 = vld [vmem:[#allocation7 + $0xa8] sm:$0xff]   ;;  %v1152_v24 = vld [vmem:[#allocation7 + $0x70] sm:$0xff]   ;;  %v1156_v28 = vld [vmem:[#allocation7 + $0x78] sm:$0xff]  }
  0x3f   :  { %1026 = vmatprep.subr.bf16.mxu1 %v1137_v9  ;;  %v1153_v25 = vld [vmem:[#allocation7 + $0xf0] sm:$0xff]   ;;  %v1157_v29 = vld [vmem:[#allocation7 + $0xf8] sm:$0xff]   ;;  %v67_v32 = vld [vmem:[#allocation4 + $0x8] sm:$0xff] }
  0x40   :  { %v1154_v26 = vld [vmem:[#allocation7 + $0x30] sm:$0xff]   ;;  %v1158_v30 = vld [vmem:[#allocation7 + $0x38] sm:$0xff]   ;;  %v75_v33 = vld [vmem:[#allocation4 + $0x48] sm:$0xff] }
  0x41   :  { %1005 = vmatpush3.bf16.msra.mxu0 %v1138_v10  ;;  %v1155_v27 = vld [vmem:[#allocation7 + $0xb0] sm:$0xff]   ;;  %v1159_v31 = vld [vmem:[#allocation7 + $0xb8] sm:$0xff]   ;;  %v83_v35 = vpack.c.bf16 %v75_v33, %v67_v32  ;;  %v66_v37 = vld [vmem:[#allocation4] sm:$0xff] }
  0x42   :  { %1027 = vmatpush3.bf16.msra.mxu1 %v1139_v11  ;;  %1006 = vmatprep.subr.bf16.mxu0 %v1140_v12  ;;  %v69_v34 = vld [vmem:[#allocation4 + $0x18] sm:$0xff]  ;;  %v74_v38 = vld [vmem:[#allocation4 + $0x40] sm:$0xff]  ;;  %v68_v41 = vld [vmem:[#allocation4 + $0x10] sm:$0xff] }
  0x43   :  { %1028 = vmatprep.subr.bf16.mxu1 %v1141_v13  ;;  %v77_v36 = vld [vmem:[#allocation4 + $0x58] sm:$0xff]  ;;  %v82_v40 = vpack.c.bf16 %v74_v38, %v66_v37  ;;  %v76_v42 = vld [vmem:[#allocation4 + $0x50] sm:$0xff]  ;;  %634 = vmatprep.mubr.bf16.mxu0 %v83_v35  ;;  %v1160_v44 = vld [vmem:[#allocation7 + $0x140] sm:$0xff]  }
  0x44   :  { %v85_v39 = vpack.c.bf16 %v77_v36, %v69_v34  ;;  %v84_v43 = vpack.c.bf16 %v76_v42, %v68_v41  ;;  %v1161_v45 = vld [vmem:[#allocation7 + $0x1c0] sm:$0xff]   ;;  %v1164_v48 = vld [vmem:[#allocation7 + $0x148] sm:$0xff]   ;;  %v1168_v52 = vld [vmem:[#allocation7 + $0x150] sm:$0xff]  }
  0x45   :  { %1007 = vmatpush3.bf16.msra.mxu0 %v1142_v14  ;;  %v1162_v46 = vld [vmem:[#allocation7 + $0x100] sm:$0xff]   ;;  %v1165_v49 = vld [vmem:[#allocation7 + $0x1c8] sm:$0xff]   ;;  %v1169_v53 = vld [vmem:[#allocation7 + $0x1d0] sm:$0xff]  }
  0x46   :  { %1029 = vmatpush3.bf16.msra.mxu1 %v1143_v15  ;;  %1008 = vmatprep.subr.bf16.mxu0 %v1144_v16  ;;  %v1163_v47 = vld [vmem:[#allocation7 + $0x180] sm:$0xff]   ;;  %v1166_v50 = vld [vmem:[#allocation7 + $0x108] sm:$0xff]   ;;  %v1170_v54 = vld [vmem:[#allocation7 + $0x110] sm:$0xff]  }
  0x47   :  { %1030 = vmatprep.subr.bf16.mxu1 %v1145_v17  ;;  %675 = vmatprep.mubr.bf16.mxu1 %v85_v39  ;;  %v1167_v51 = vld [vmem:[#allocation7 + $0x188] sm:$0xff]   ;;  %v1171_v55 = vld [vmem:[#allocation7 + $0x190] sm:$0xff]   ;;  %v1172_v56 = vld [vmem:[#allocation7 + $0x158] sm:$0xff]  }
  0x48   :  { %v1173_v57 = vld [vmem:[#allocation7 + $0x1d8] sm:$0xff]   ;;  %v1176_v60 = vld [vmem:[#allocation7 + $0x160] sm:$0xff]   ;;  %v1180_v0 = vld [vmem:[#allocation7 + $0x168] sm:$0xff]  }
  0x49   :  { %1009 = vmatpush3.bf16.msra.mxu0 %v1146_v18  ;;  %v1174_v58 = vld [vmem:[#allocation7 + $0x118] sm:$0xff]   ;;  %v1177_v61 = vld [vmem:[#allocation7 + $0x1e0] sm:$0xff]   ;;  %v1181_v1 = vld [vmem:[#allocation7 + $0x1e8] sm:$0xff]  }
  0x4a   :  { %1031 = vmatpush3.bf16.msra.mxu1 %v1147_v19  ;;  %1010 = vmatprep.subr.bf16.mxu0 %v1148_v20  ;;  %v1175_v59 = vld [vmem:[#allocation7 + $0x198] sm:$0xff]   ;;  %v1178_v62 = vld [vmem:[#allocation7 + $0x120] sm:$0xff]   ;;  %v1182_v2 = vld [vmem:[#allocation7 + $0x128] sm:$0xff]  }
  0x4b   :  { %1032 = vmatprep.subr.bf16.mxu1 %v1149_v21  ;;  %v1179_v63 = vld [vmem:[#allocation7 + $0x1a0] sm:$0xff]   ;;  %v1183_v3 = vld [vmem:[#allocation7 + $0x1a8] sm:$0xff]   ;;  %v1184_v4 = vld [vmem:[#allocation7 + $0x170] sm:$0xff]  }
  0x4c   :  { %v1185_v5 = vld [vmem:[#allocation7 + $0x1f0] sm:$0xff]   ;;  %v1188_v8 = vld [vmem:[#allocation7 + $0x178] sm:$0xff]   ;;  %v71_v12 = vld [vmem:[#allocation4 + $0x28] sm:$0xff] }
  0x4d   :  { %1011 = vmatpush3.bf16.msra.mxu0 %v1150_v22  ;;  %v1186_v6 = vld [vmem:[#allocation7 + $0x130] sm:$0xff]   ;;  %v1189_v9 = vld [vmem:[#allocation7 + $0x1f8] sm:$0xff]   ;;  %v79_v13 = vld [vmem:[#allocation4 + $0x68] sm:$0xff] }
  0x4e   :  { %1033 = vmatpush3.bf16.msra.mxu1 %v1151_v23  ;;  %1012 = vmatprep.subr.bf16.mxu0 %v1152_v24  ;;  %v1187_v7 = vld [vmem:[#allocation7 + $0x1b0] sm:$0xff]   ;;  %v1190_v10 = vld [vmem:[#allocation7 + $0x138] sm:$0xff]   ;;  %v87_v16 = vpack.c.bf16 %v79_v13, %v71_v12  ;;  %v70_v18 = vld [vmem:[#allocation4 + $0x20] sm:$0xff] }
  0x4f   :  { %1034 = vmatprep.subr.bf16.mxu1 %v1153_v25  ;;  %v1191_v11 = vld [vmem:[#allocation7 + $0x1b8] sm:$0xff]   ;;  %v78_v19 = vld [vmem:[#allocation4 + $0x60] sm:$0xff]  ;;  %v72_v20 = vld [vmem:[#allocation4 + $0x30] sm:$0xff]  ;;  %v1300_v25 = vmov 0.0  }
  0x50   :  { %v73_v14 = vld [vmem:[#allocation4 + $0x38] sm:$0xff]  ;;  %v86_v21 = vpack.c.bf16 %v78_v19, %v70_v18  ;;  %v80_v22 = vld [vmem:[#allocation4 + $0x70] sm:$0xff]  ;;  %v1192_v24 = vld [vmem:[#allocation9] sm:$0xff]  }
  0x51   :  { %1013 = vmatpush3.bf16.msra.mxu0 %v1154_v26  ;;  %v81_v15 = vld [vmem:[#allocation4 + $0x78] sm:$0xff]  ;;  %v88_v23 = vpack.c.bf16 %v80_v22, %v72_v20  ;;  %v1193_v26 = vld [vmem:[#allocation9 + $0x8] sm:$0xff]  }
  0x52   :  { %1035 = vmatpush3.bf16.msra.mxu1 %v1155_v27  ;;  %1014 = vmatprep.subr.bf16.mxu0 %v1156_v28  ;;  %v89_v17 = vpack.c.bf16 %v81_v15, %v73_v14  ;;  %v1194_v27 = vld [vmem:[#allocation9 + $0x10] sm:$0xff]   ;;  %v1195_v28 = vld [vmem:[#allocation9 + $0x18] sm:$0xff]  }
  0x53   :  { %1036 = vmatprep.subr.bf16.mxu1 %v1157_v29  ;;  %v1196_v29 = vld [vmem:[#allocation9 + $0x20] sm:$0xff]   ;;  %v1199_v32 = vld [vmem:[#allocation9 + $0x38] sm:$0xff]  }
  0x55   :  { %1015 = vmatpush3.bf16.msra.mxu0 %v1158_v30  ;;  %v1197_v30 = vld [vmem:[#allocation9 + $0x28] sm:$0xff]  }
  0x56   :  { %1037 = vmatpush3.bf16.msra.mxu1 %v1159_v31  ;;  %1044 = vmatprep.subr.bf16.mxu0 %v1160_v44  ;;  %v1198_v31 = vld [vmem:[#allocation9 + $0x30] sm:$0xff]  }
  0x57   :  { %1066 = vmatprep.subr.bf16.mxu1 %v1161_v45 }
  0x58   :  { %635 = vmatmul.mubr.bf16.vlgmr.msra.gmra.mrb[0].mxu0 %v82_v40 }
  0x59   :  { %676 = vmatmul.mubr.bf16.vlgmr.msra.gmra.mrb[0].mxu1 %v84_v43  ;;  %1045 = vmatpush3.bf16.msra.mxu0 %v1162_v46 }
  0x5a   :  { %1067 = vmatpush3.bf16.msra.mxu1 %v1163_v47  ;;  %1046 = vmatprep.subr.bf16.mxu0 %v1164_v48 }
  0x5b   :  { %1068 = vmatprep.subr.bf16.mxu1 %v1165_v49  ;;  %716 = vmatprep.mubr.bf16.mxu0 %v87_v16 }
  0x5c   :  { %757 = vmatprep.mubr.bf16.mxu1 %v89_v17 }
  0x5d   :  { %1047 = vmatpush3.bf16.msra.mxu0 %v1166_v50 }
  0x5e   :  { %1069 = vmatpush3.bf16.msra.mxu1 %v1167_v51  ;;  %1048 = vmatprep.subr.bf16.mxu0 %v1168_v52 }
  0x5f   :  { %1070 = vmatprep.subr.bf16.mxu1 %v1169_v53 }
  0x61   :  { %1049 = vmatpush3.bf16.msra.mxu0 %v1170_v54 }
  0x62   :  { %1071 = vmatpush3.bf16.msra.mxu1 %v1171_v55  ;;  %1050 = vmatprep.subr.bf16.mxu0 %v1172_v56 }
  0x63   :  { %1072 = vmatprep.subr.bf16.mxu1 %v1173_v57 }
  0x65   :  { %1051 = vmatpush3.bf16.msra.mxu0 %v1174_v58 }
  0x66   :  { %1073 = vmatpush3.bf16.msra.mxu1 %v1175_v59  ;;  %1052 = vmatprep.subr.bf16.mxu0 %v1176_v60  ;;  %v989_v59 = vld [vmem:[%s1406_s2] ss:$0 sm:$0xff]  ;;  %s1302_s2 = smov [#allocation10]  }
  0x67   :  { %1074 = vmatprep.subr.bf16.mxu1 %v1177_v61  ;;  %s912_s15 = sshll.u32 %s1302_s2, 4  ;;  %s913_s15 = int_to_ptr.vmem [resolvable:$true] %s912_s15 }
  0x68   :  { %p1271_p11 = scmp.lt.s32.totalorder %s913_s15, %s913_s15 }
  0x69   :  { %1053 = vmatpush3.bf16.msra.mxu0 %v1178_v62 }
  0x6a   :  { %1075 = vmatpush3.bf16.msra.mxu1 %v1179_v63  ;;  %1054 = vmatprep.subr.bf16.mxu0 %v1180_v0  ;;  %v990_v63 = vld [vmem:[%s1407_s3] ss:$0 sm:$0xff]  ;;  %s1266_s3 = scalar_lea.vmem %s913_s15, 256 }
  0x6b   :  { %1076 = vmatprep.subr.bf16.mxu1 %v1181_v1  ;;  %p1267_p10 = scmp.ne.s32.totalorder %s913_s15, %s1266_s3  ;;  %p1272_p12 = scmp.lt.s32.totalorder %s1266_s3, %s1266_s3 }
  0x6d   :  { %1055 = vmatpush3.bf16.msra.mxu0 %v1182_v2  ;;  %p1273_p13 = por %p1272_p12, %p1271_p11 }
  0x6e   :  { %1077 = vmatpush3.bf16.msra.mxu1 %v1183_v3  ;;  %1056 = vmatprep.subr.bf16.mxu0 %v1184_v4 }
  0x6f   :  { %1078 = vmatprep.subr.bf16.mxu1 %v1185_v5  ;;  %p1274_p0 = pnand %p1273_p13, %p1267_p10 }
  0x71   :  { %1057 = vmatpush3.bf16.msra.mxu0 %v1186_v6 }
  0x72   :  { %1079 = vmatpush3.bf16.msra.mxu1 %v1187_v7  ;;  %1058 = vmatprep.subr.bf16.mxu0 %v1188_v8  ;;  %v991_v8 = vld [vmem:[%s1409_s5] ss:$0 sm:$0xff] }
  0x73   :  { %1080 = vmatprep.subr.bf16.mxu1 %v1189_v9 }
  0x75   :  { %1059 = vmatpush3.bf16.msra.mxu0 %v1190_v10 }
  0x76   :  { %1081 = vmatpush3.bf16.msra.mxu1 %v1191_v11  ;;  %1097 = vmatprep.subr.bf16.mxu0 %v1300_v25 }
  0x78   :  { %717 = vmatmul.mubr.bf16.vlgmr.msra.gmra.mrb[4].mxu0 %v86_v21 }
  0x79   :  { %758 = vmatmul.mubr.bf16.vlgmr.msra.gmra.mrb[4].mxu1 %v88_v23  ;;  %1098 = vmatpush3.bf16.msra.mxu0 %v1192_v24 }
  0x7a   :  { %1099 = vmatprep.subr.bf16.mxu0 %v1300_v25  ;;  %1113 = vmatprep.mubr.msk.bf16.mxu0 %vm1301_vm0, %v1300_v25 }
  0x7d   :  { %1100 = vmatpush3.bf16.msra.mxu0 %v1193_v26 }
  0x7e   :  { %1101 = vmatprep.subr.bf16.mxu0 %v1300_v25 }
  0x81   :  { %1102 = vmatpush3.bf16.msra.mxu0 %v1194_v27 }
  0x82   :  { %1103 = vmatprep.subr.bf16.mxu0 %v1300_v25 }
  0x85   :  { %1104 = vmatpush3.bf16.msra.mxu0 %v1195_v28 }
  0x86   :  { %1105 = vmatprep.subr.bf16.mxu0 %v1300_v25 }
  0x89   :  { %1106 = vmatpush3.bf16.msra.mxu0 %v1196_v29 }
  0x8a   :  { %1107 = vmatprep.subr.bf16.mxu0 %v1300_v25 }
  0x8d   :  { %1108 = vmatpush3.bf16.msra.mxu0 %v1197_v30 }
  0x8e   :  { %1109 = vmatprep.subr.bf16.mxu0 %v1300_v25 }
  0x91   :  { %1110 = vmatpush3.bf16.msra.mxu0 %v1198_v31 }
  0x92   :  { %1111 = vmatprep.subr.bf16.mxu0 %v1300_v25 }
  0x95   :  { %1112 = vmatpush3.bf16.msra.mxu0 %v1199_v32 }
 0x12b   :  { %v1016_v33 = vpop.f32.mrb[0].mxu0 }
 0x12c   :  { %v1038_v34 = vpop.f32.mrb[0].mxu1  ;;  %v1017_v35 = vpop.f32.mrb[1].mxu0 }
 0x12d   :  { %v1018_v36 = vadd.f32 %v1017_v35, %v1016_v33  ;;  %v1039_v37 = vpop.f32.mrb[1].mxu1  ;;  %v1019_v38 = vpop.f32.mrb[2].mxu0 }
 0x12e   :  { %v1040_v39 = vadd.f32 %v1039_v37, %v1038_v34  ;;  %v1041_v40 = vpop.f32.mrb[2].mxu1  ;;  %v1020_v41 = vpop.f32.mrb[3].mxu0 }
 0x12f   :  { %v1021_v42 = vadd.f32 %v1020_v41, %v1019_v38  ;;  %v1042_v43 = vpop.f32.mrb[3].mxu1 }
 0x130   :  { %v678_v44 = vadd.f32 %v1040_v39, %v1018_v36  ;;  %v1043_v45 = vadd.f32 %v1042_v43, %v1041_v40 }
 0x132   :  { %v681_v46 = vadd.f32 %v1043_v45, %v1021_v42 }
 0x14b   :  { %v1060_v47 = vpop.f32.mrb[4].mxu0 }
 0x14c   :  { %v1082_v48 = vpop.f32.mrb[4].mxu1  ;;  %v1061_v49 = vpop.f32.mrb[5].mxu0 }
 0x14d   :  { %v1062_v50 = vadd.f32 %v1061_v49, %v1060_v47  ;;  %v1083_v51 = vpop.f32.mrb[5].mxu1  ;;  %v1063_v52 = vpop.f32.mrb[6].mxu0 }
 0x14e   :  { %v1084_v53 = vadd.f32 %v1083_v51, %v1082_v48  ;;  %v1085_v54 = vpop.f32.mrb[6].mxu1  ;;  %v1064_v55 = vpop.f32.mrb[7].mxu0 }
 0x14f   :  { %v719_v56 = vadd.f32 %v1062_v50, %v678_v44  ;;  %v1065_v57 = vadd.f32 %v1064_v55, %v1063_v52  ;;  %v1086_v58 = vpop.f32.mrb[7].mxu1 }
 0x150   :  { %v1087_v60 = vadd.f32 %v1086_v58, %v1085_v54 }
 0x151   :  { %v760_v61 = vadd.f32 %v1084_v53, %v719_v56  ;;  %v722_v62 = vadd.f32 %v1065_v57, %v681_v46 }
 0x153   :  { %v777_v0 = vmul.f32 %v989_v59, %v760_v61  ;;  %v763_v1 = vadd.f32 %v1087_v60, %v722_v62 }
 0x155   :  { %v786_v2 = vadd.f32 %v990_v63, %v777_v0  ;;  %v778_v3 = vmul.f32 %v989_v59, %v763_v1 }
 0x157   :  { %v787_v4 = vadd.f32 %v990_v63, %v778_v3  ;;  %v788_v5 = vmax.f32 %v786_v2, 0.0 }
 0x159   :  { %v789_v6 = vmax.f32 %v787_v4, 0.0 }
 0x15b   :  { %v790_v7 = vpack.c.bf16 %v789_v6, %v788_v5 }
 0x15d   :  { %1114 = vmatmul.mubr.bf16.vlgmr.msra.gmra.mrb[8].mxu0 %v790_v7 }
 0x230   :  { %v898_v9 = vpop.f32.mrb[8].mxu0 }
 0x231   :  { %v899_v10 = vadd.f32 %v991_v8, %v898_v9  ;;  %v1115_v11 = vpop.f32.mrb[9].mxu0 }
 0x232   :  { %v901_v12 = vpop.f32.mrb[10].mxu0 }
 0x233   :  { %905 = vst [vmem:[#allocation10] sm:$0xff] %v899_v10  ;;  %v902_v13 = vadd.f32 %v991_v8, %v901_v12  ;;  %v1116_v14 = vpop.f32.mrb[11].mxu0 }
 0x235   :  { %906 = vst [vmem:[#allocation10 + $0x8] sm:$0xff] %v902_v13 }
 0x236   :  { %1277 = shalt.err (!%p1274_p0)
}
 0x237   :  { %s1278_s17 = scalar_lea.hbm %s1410_s6, 256 }
 0x238   :  { %p1279_p1 = scmp.ne.s32.totalorder %s1410_s6, %s1278_s17  ;;  %p1282_p2 = scmp.lt.u32.totalorder %s1278_s17, %s1410_s6 }
 0x23a   :  { %p1284_p3 = pnand %p1282_p2, %p1279_p1 }
 0x23c   :  { %1287 = shalt.err (!%p1284_p3)
}
 0x23d   :  { %s1303_s21 = smov 128   ;;  %s1304_s22 = smov 8  }
 0x23e   :  { %918 = dma.vmem_to_hbm [thread:$0]  %s913_s15, 256, %s1410_s6, [#allocation6], %s1303_s21, %s1303_s21, %s1304_s22  }
 0x23f   :  { %1292 = dma.done.wait [#allocation6], 256  }
 0x240   :  { %1293 = vsyncadd [#allocation6], 4294967040 }
 0x241   :  { %922 = vsyncpa [#allocation5], 1 }
 0x242   :  { %923 = vsyncpa [#allocation8], 1 }
 0x243   :  { %924 = vsyncpa [#allocation6], 1 }

</bundles_post_ra>
